<compile_context>
chip_gen: v6e
topology: v6e:2x2x1
jax: 0.10.0
libtpu: 0.0.40
codegen_flags: <defaults>
</compile_context>

<pallas_src>
import functools
import warnings

import numpy as np
import jax
import jax.numpy as jnp
from jax import lax
from jax.experimental import pallas as pl
from jax.experimental.pallas import tpu as pltpu

# Donation is an optimization only; silence the advisory warning if XLA decides
# it cannot reuse the donated min_dists buffer.
warnings.filterwarnings("ignore", message="Some donated buffers were not usable.*")


def _round_up(v, m):
    return ((v + m - 1) // m) * m


def _knn_kernel(meta_ref,                     # SMEM: [x_start, y_start, n_valid_y, out_block_base]
                x_ref, y_ref, ysq_ref, prev_ref,   # VMEM inputs
                out_ref,                      # VMEM output window (tx, 1)
                run_min_ref,                  # VMEM scratch (tx, 128)
                *, ty, use_bf16):
    i = pl.program_id(0)                      # x row-tile (parallel axis)
    j = pl.program_id(1)                      # y row-tile (reduction axis)
    tx = x_ref.shape[0]

    @pl.when(j == 0)
    def _init():
        run_min_ref[...] = jnp.full(run_min_ref.shape, jnp.inf, run_min_ref.dtype)

    x = x_ref[...]                            # (tx, D) f32, resident per x-tile
    y = y_ref[...]                            # (ty, D) streamed row tile

    # MXU cross term, contracting last dims of both operands (no y transpose).
    dn = (((1,), (1,)), ((), ()))
    if use_bf16:
        xy = lax.dot_general(x.astype(jnp.bfloat16), y, dn,
                             preferred_element_type=jnp.float32)
    else:
        xy = lax.dot_general(x, y, dn, preferred_element_type=jnp.float32)
    # Squared distance minus the per-row |x|^2 constant (added in the epilogue):
    #   scores[i, c] = |y_c|^2 - 2 * x_i . y_c
    scores = ysq_ref[...] - 2.0 * xy          # (1, ty) broadcast - (tx, ty)

    x_start = meta_ref[0]
    y_start = meta_ref[1]
    n_valid = meta_ref[2]
    tile_lo = j * ty                          # first (padded-local) y column of this tile
    x_lo = x_start + i * tx                   # global id of first x row in this tile

    def _fold(tile):
        # Elementwise (VALU-only) running min into the (tx, 128) accumulator;
        # the cross-lane reduction is done once in the epilogue.
        m = run_min_ref[...]
        for s in range(ty // 128):
            m = jnp.minimum(m, tile[:, s * 128:(s + 1) * 128])
        run_min_ref[...] = m

    overlap = jnp.logical_and(y_start + tile_lo < x_lo + tx,
                              x_lo < y_start + tile_lo + ty)
    ragged = tile_lo + ty > n_valid
    need_mask = jnp.logical_or(overlap, ragged)

    @pl.when(need_mask)
    def _masked():
        row = lax.broadcasted_iota(jnp.int32, (tx, ty), 0)
        col = lax.broadcasted_iota(jnp.int32, (tx, ty), 1)
        y_local = tile_lo + col
        bad = jnp.logical_or(y_local >= n_valid,                    # padded / OOB y rows
                             x_lo + row == y_start + y_local)       # same sample id
        _fold(jnp.where(bad, jnp.inf, scores))

    @pl.when(jnp.logical_not(need_mask))
    def _plain():
        _fold(scores)

    @pl.when(j == pl.num_programs(1) - 1)
    def _finalize():
        part = jnp.min(run_min_ref[...], axis=1, keepdims=True)     # (tx, 1), XLU once
        x_sq = jnp.sum(x * x, axis=1, keepdims=True)                # f32 |x|^2, once
        d = jnp.sqrt(jnp.maximum(part + x_sq, 0.0))                 # deferred sqrt
        out_ref[...] = jnp.minimum(d, prev_ref[...]).astype(out_ref.dtype)


def _knn_core(min_dists, x, x_idx_start, y, y_idx_start, ty, use_bf16, *, aliased):
    x_bsize = x.shape[0]
    y_bsize = y.shape[0]
    sample_num = min_dists.shape[0]

    xf = x.reshape(x_bsize, -1).astype(jnp.float32)
    feat = xf.shape[1]
    yf32 = y.reshape(y_bsize, -1).astype(jnp.float32)

    # |y|^2 precomputed once (single read pass over y), padded columns -> +inf.
    ysq = jnp.sum(yf32 * yf32, axis=1)
    y_stream = yf32.astype(jnp.bfloat16) if use_bf16 else yf32

    # x row-tile size: multiple tiles enable megacore ("parallel") sharding.
    if x_bsize > 128 and x_bsize % 128 == 0:
        tx = 128   # TODO(synk): per-generation tx (256 fills v6e/v7x MXU rows)
    else:
        tx = x_bsize
    n_x_tiles = x_bsize // tx

    assert ty % 128 == 0, "ty must be a multiple of 128 lanes"
    ty_eff = min(int(ty), _round_up(y_bsize, 128))

    # VMEM budget: double-buffered y tiles + resident x + scratch.  Shrink ty
    # if needed and set the scoped-VMEM limit explicitly (v7x: 64 MiB phys).
    y_elt = 2 if use_bf16 else 4

    def _vmem_need(t):
        return (2 * t * feat * y_elt          # y tile double buffer
                + 2 * tx * feat * 4           # x tile (conservatively 2 buffers)
                + 2 * 8 * t * 4               # |y|^2 tile (padded to 8 sublanes)
                + tx * 128 * 4                # running-min scratch
                + 4 * tx * 4)                 # prev + out windows
    budget = 40 * 1024 * 1024
    while ty_eff > 128 and _vmem_need(ty_eff) > budget:
        ty_eff -= 128
    # TODO(synk): if feat alone blows the budget, add an inner feature grid axis
    # accumulating xy into a VMEM f32 scratch instead of full-D blocks.

    n_y_tiles = (y_bsize + ty_eff - 1) // ty_eff
    ny_pad = n_y_tiles * ty_eff
    if ny_pad != y_bsize:
        ysq = jnp.pad(ysq, (0, ny_pad - y_bsize), constant_values=jnp.inf)
    ysq = ysq.reshape(1, ny_pad)

    md2 = min_dists.reshape(sample_num, 1)
    if aliased:
        prev_arr = md2                                   # full buffer, aliased in/out
        out_rows = sample_num
        out_block = (x_idx_start // tx).astype(jnp.int32)
    else:
        prev_arr = lax.dynamic_slice(md2, (x_idx_start, 0), (x_bsize, 1))
        out_rows = x_bsize
        out_block = jnp.int32(0)

    meta = jnp.stack([jnp.asarray(x_idx_start, jnp.int32),
                      jnp.asarray(y_idx_start, jnp.int32),
                      jnp.int32(y_bsize),
                      out_block])

    grid_spec = pltpu.PrefetchScalarGridSpec(
        num_scalar_prefetch=1,
        grid=(n_x_tiles, n_y_tiles),
        in_specs=[
            pl.BlockSpec((tx, feat),     lambda i, j, m: (i, 0)),          # x row tile
            pl.BlockSpec((ty_eff, feat), lambda i, j, m: (j, 0)),          # y row tile (no transpose)
            pl.BlockSpec((1, ty_eff),    lambda i, j, m: (0, j)),          # |y|^2 tile
            pl.BlockSpec((tx, 1),        lambda i, j, m: (m[3] + i, 0)),   # prev min window
        ],
        out_specs=pl.BlockSpec((tx, 1),  lambda i, j, m: (m[3] + i, 0)),
        scratch_shapes=[pltpu.VMEM((tx, 128), jnp.float32)],               # running min
    )

    vmem_limit = int(min(64 * 1024 * 1024,
                         max(32 * 1024 * 1024,
                             _vmem_need(ty_eff) * 5 // 4 + (2 << 20))))

    kwargs = {}
    if aliased:
        # Flat inputs: (meta, xf, y_stream, ysq, prev_arr) -> prev is input 4.
        kwargs["input_output_aliases"] = {4: 0}

    out = pl.pallas_call(
        functools.partial(_knn_kernel, ty=ty_eff, use_bf16=use_bf16),
        out_shape=jax.ShapeDtypeStruct((out_rows, 1), jnp.float32),
        grid_spec=grid_spec,
        compiler_params=pltpu.CompilerParams(
            dimension_semantics=("parallel", "arbitrary"),
            vmem_limit_bytes=vmem_limit),
        **kwargs,
    )(meta, xf, y_stream, ysq, prev_arr)

    if aliased:
        return out.reshape(sample_num)
    upd = lax.dynamic_update_slice(md2, out, (x_idx_start, 0))
    return upd.reshape(sample_num)


@functools.partial(jax.jit, static_argnums=(5, 6), donate_argnums=(0,))
def _knn_update_aliased(min_dists, x, x_idx_start, y, y_idx_start, ty, use_bf16):
    return _knn_core(min_dists, x, x_idx_start, y, y_idx_start, ty, use_bf16,
                     aliased=True)


@functools.partial(jax.jit, static_argnums=(5, 6), donate_argnums=(0,))
def _knn_update_sliced(min_dists, x, x_idx_start, y, y_idx_start, ty, use_bf16):
    return _knn_core(min_dists, x, x_idx_start, y, y_idx_start, ty, use_bf16,
                     aliased=False)


def knn_min_update(min_dists, x, x_idx_start, y, y_idx_start, *, ty=2048, use_bf16=False):
    """Functional equivalent of KNNComputer.forward (K=1). Returns updated min_dists."""
    x_bsize = x.shape[0]
    sample_num = min_dists.shape[0]
    xs = jnp.asarray(x_idx_start, jnp.int32)
    ys = jnp.asarray(y_idx_start, jnp.int32)

    static_start = isinstance(x_idx_start, (int, np.integer))
    can_alias = (static_start
                 and x_bsize % 8 == 0
                 and int(x_idx_start) % x_bsize == 0
                 and int(x_idx_start) + x_bsize <= sample_num)
    if can_alias:
        try:
            return _knn_update_aliased(min_dists, x, xs, y, ys, int(ty), bool(use_bf16))
        except Exception:  # conservative fallback if in-place aliasing is unavailable
            pass
    return _knn_update_sliced(min_dists, x, xs, y, ys, int(ty), bool(use_bf16))


class KNNComputerJAX:
    """JAX/Pallas port of KNNComputer (K=1 only)."""

    def __init__(self, sample_num, K=1):
        assert K == 1, "Only K=1 is implemented in the Pallas kernel"
        self.K = K
        self.num_computed = jnp.zeros([], jnp.float32)
        self.min_dists = jnp.full((sample_num,), jnp.inf, dtype=jnp.float32)

    def forward(self, x, x_idx_start, y, y_idx_start):
        self.min_dists = knn_min_update(
            self.min_dists, x, x_idx_start, y, y_idx_start)

    def get_mean_nn_dist(self, sidx, eidx):
        return jnp.mean(self.min_dists[sidx:eidx])


def _reference(min_dists, x, x_idx_start, y, y_idx_start):
    xb, yb = x.shape[0], y.shape[0]
    xf = x.reshape(xb, -1).astype(jnp.float32)
    yf = y.reshape(yb, -1).astype(jnp.float32)
    dist = jnp.sqrt(jnp.sum((xf[:, None, :] - yf[None, :, :]) ** 2, axis=-1))
    xi = jnp.arange(x_idx_start, x_idx_start + xb)[:, None]
    yi = jnp.arange(y_idx_start, y_idx_start + yb)[None, :]
    dist = jnp.where(xi == yi, jnp.inf, dist)
    prev = lax.dynamic_slice(min_dists, (x_idx_start,), (xb,))
    new_min = jnp.minimum(jnp.min(dist, axis=1), prev)
    return lax.dynamic_update_slice(min_dists, new_min, (x_idx_start,))


if __name__ == "__main__":
    key = jax.random.PRNGKey(0)
    k1, k2, k3, k4, k5 = jax.random.split(key, 5)

    sample_num = 32
    # (batch, channels, H, W) -> flattened feature dim D = 4*8*8 = 256
    x1 = jax.random.normal(k1, (8, 4, 8, 8), dtype=jnp.float32)
    x2 = jax.random.normal(k2, (8, 4, 8, 8), dtype=jnp.float32)
    y1 = jax.random.normal(k3, (16, 4, 8, 8), dtype=jnp.float32)
    y2 = jax.random.normal(k4, (16, 4, 8, 8), dtype=jnp.float32)

    knn = KNNComputerJAX(sample_num, K=1)
    knn.forward(x1, 0, y1, 4)    # y ids 4..19 overlap x ids 4..7 -> identity-mask path
    knn.forward(x1, 0, y2, 16)   # disjoint id ranges -> unmasked fast path
    knn.forward(x2, 8, y1, 4)    # non-zero x window -> aliased output block 1
    out = jax.block_until_ready(knn.min_dists)

    ref = jnp.full((sample_num,), jnp.inf, dtype=jnp.float32)
    ref = _reference(ref, x1, 0, y1, 4)
    ref = _reference(ref, x1, 0, y2, 16)
    ref = _reference(ref, x2, 8, y1, 4)

    assert bool(jnp.allclose(out, ref, rtol=1e-3, atol=1e-3)), "mismatch vs reference"
    assert bool(jnp.isfinite(knn.get_mean_nn_dist(0, 16)))

    # Multi-y-tile + ragged-last-tile path (ty forced small to exercise tiling).
    y3 = jax.random.normal(k5, (160, 4, 8, 8), dtype=jnp.float32)
    md = jnp.full((sample_num,), jnp.inf, dtype=jnp.float32)
    md = knn_min_update(md, x1, 0, y3, 2, ty=128)
    md = jax.block_until_ready(md)
    ref2 = _reference(jnp.full((sample_num,), jnp.inf, dtype=jnp.float32), x1, 0, y3, 2)
    assert bool(jnp.allclose(md, ref2, rtol=1e-3, atol=1e-3)), "mismatch vs reference (tiled y)"

    print("KERNEL_OK")
</pallas_src>

<mosaic_0001>
module attributes {stable_mosaic.version = 11 : i64} {
  func.func @_knn_kernel(%arg0: i32, %arg1: i32, %arg2: memref<4xi32, #tpu.memory_space<smem>>, %arg3: memref<8x256xf32, #tpu.memory_space<vmem>>, %arg4: memref<128x256xf32, #tpu.memory_space<vmem>>, %arg5: memref<1x128xf32, #tpu.memory_space<vmem>>, %arg6: memref<8x1xf32, #tpu.memory_space<vmem>>, %arg7: memref<8x1xf32, #tpu.memory_space<vmem>>, %arg8: memref<8x128xf32, #tpu.memory_space<vmem>>) attributes {dimension_semantics = [#tpu.dimension_semantics<parallel>, #tpu.dimension_semantics<arbitrary>], iteration_bounds = array<i64: 1, 1>, scalar_prefetch = 1 : i64, scratch_operands = 1 : i64, tpu.core_type = #tpu.core_type<tc>, window_params = [{transform_indices = @transform_0, window_bounds = array<i64: 8, 256>}, {transform_indices = @transform_1, window_bounds = array<i64: 128, 256>}, {transform_indices = @transform_2, window_bounds = array<i64: 1, 128>}, {transform_indices = @transform_3, window_bounds = array<i64: 8, 1>}, {transform_indices = @transform_4, window_bounds = array<i64: 8, 1>}]} {
    %c0_i32 = arith.constant 0 : i32
    %0 = arith.cmpi eq, %arg1, %c0_i32 : i32
    %1 = arith.extui %0 : i1 to i32
    %c0_i32_0 = arith.constant 0 : i32
    %2 = arith.cmpi ne, %1, %c0_i32_0 : i32
    scf.if %2 {
      %cst_15 = arith.constant 0x7F800000 : f32
      %35 = vector.broadcast %cst_15 : f32 to vector<8x128xf32>
      %c0_16 = arith.constant 0 : index
      %c0_17 = arith.constant 0 : index
      %36 = vector.load %arg8[%c0_16, %c0_17] : memref<8x128xf32, #tpu.memory_space<vmem>>, vector<8x128xf32>
      tpu.vector_store %arg8[%c0_16, %c0_17], %35 {strides = array<i32>} : memref<8x128xf32, #tpu.memory_space<vmem>>, vector<8x128xf32>,
    } else {
    }
    %c0 = arith.constant 0 : index
    %c0_1 = arith.constant 0 : index
    %3 = vector.load %arg3[%c0, %c0_1] : memref<8x256xf32, #tpu.memory_space<vmem>>, vector<8x256xf32>
    %c0_2 = arith.constant 0 : index
    %c0_3 = arith.constant 0 : index
    %4 = vector.load %arg4[%c0_2, %c0_3] : memref<128x256xf32, #tpu.memory_space<vmem>>, vector<128x256xf32>
    %cst = arith.constant dense<0.000000e+00> : vector<8x128xf32>
    %5 = tpu.matmul %3, %4, %cst {dimension_numbers = #tpu.dot_dimension_numbers<[1], [1], [0], [0], [0, 0, 1, 0], [], []>} : vector<8x256xf32>, vector<128x256xf32>, vector<8x128xf32> -> vector<8x128xf32>
    %c0_4 = arith.constant 0 : index
    %c0_5 = arith.constant 0 : index
    %6 = vector.load %arg5[%c0_4, %c0_5] : memref<1x128xf32, #tpu.memory_space<vmem>>, vector<1x128xf32>
    %cst_6 = arith.constant 2.000000e+00 : f32
    %7 = vector.broadcast %cst_6 : f32 to vector<8x128xf32>
    %8 = arith.mulf %7, %5 : vector<8x128xf32>
    %9 = vector.broadcast %6 : vector<1x128xf32> to vector<8x128xf32>
    %10 = arith.subf %9, %8 : vector<8x128xf32>
    %c0_7 = arith.constant 0 : index
    %11 = memref.load %arg2[%c0_7] : memref<4xi32, #tpu.memory_space<smem>>
    %c1 = arith.constant 1 : index
    %12 = memref.load %arg2[%c1] : memref<4xi32, #tpu.memory_space<smem>>
    %c2 = arith.constant 2 : index
    %13 = memref.load %arg2[%c2] : memref<4xi32, #tpu.memory_space<smem>>
    %c128_i32 = arith.constant 128 : i32
    %14 = arith.muli %arg1, %c128_i32 : i32
    %c8_i32 = arith.constant 8 : i32
    %15 = arith.muli %arg0, %c8_i32 : i32
    %16 = arith.addi %11, %15 : i32
    %17 = arith.addi %12, %14 : i32
    %c8_i32_8 = arith.constant 8 : i32
    %18 = arith.addi %16, %c8_i32_8 : i32
    %19 = arith.cmpi slt, %17, %18 : i32
    %20 = arith.addi %12, %14 : i32
    %c128_i32_9 = arith.constant 128 : i32
    %21 = arith.addi %20, %c128_i32_9 : i32
    %22 = arith.cmpi slt, %16, %21 : i32
    %23 = arith.andi %19, %22 : i1
    %c128_i32_10 = arith.constant 128 : i32
    %24 = arith.addi %14, %c128_i32_10 : i32
    %25 = arith.cmpi sgt, %24, %13 : i32
    %26 = arith.ori %23, %25 : i1
    %27 = arith.extui %26 : i1 to i32
    %c0_i32_11 = arith.constant 0 : i32
    %28 = arith.cmpi ne, %27, %c0_i32_11 : i32
    scf.if %28 {
      %35 = tpu.iota {dimensions = array<i32: 0>} : vector<8x128xi32>
      %36 = tpu.iota {dimensions = array<i32: 1>} : vector<8x128xi32>
      %37 = vector.broadcast %14 : i32 to vector<8x128xi32>
      %38 = arith.addi %37, %36 : vector<8x128xi32>
      %39 = vector.broadcast %13 : i32 to vector<8x128xi32>
      %40 = arith.cmpi sge, %38, %39 : vector<8x128xi32>
      %41 = vector.broadcast %16 : i32 to vector<8x128xi32>
      %42 = arith.addi %41, %35 : vector<8x128xi32>
      %43 = vector.broadcast %12 : i32 to vector<8x128xi32>
      %44 = arith.addi %43, %38 : vector<8x128xi32>
      %45 = arith.cmpi eq, %42, %44 : vector<8x128xi32>
      %46 = arith.ori %40, %45 : vector<8x128xi1>
      %cst_15 = arith.constant 0x7F800000 : f32
      %47 = vector.broadcast %cst_15 : f32 to vector<8x128xf32>
      %48 = arith.select %46, %47, %10 : vector<8x128xi1>, vector<8x128xf32>
      %c0_16 = arith.constant 0 : index
      %c0_17 = arith.constant 0 : index
      %49 = vector.load %arg8[%c0_16, %c0_17] : memref<8x128xf32, #tpu.memory_space<vmem>>, vector<8x128xf32>
      %50 = arith.minimumf %49, %48 : vector<8x128xf32>
      %c0_18 = arith.constant 0 : index
      %c0_19 = arith.constant 0 : index
      %51 = vector.load %arg8[%c0_18, %c0_19] : memref<8x128xf32, #tpu.memory_space<vmem>>, vector<8x128xf32>
      tpu.vector_store %arg8[%c0_18, %c0_19], %50 {strides = array<i32>} : memref<8x128xf32, #tpu.memory_space<vmem>>, vector<8x128xf32>,
    } else {
    }
    %true = arith.constant true
    %29 = arith.xori %26, %true : i1
    %30 = arith.extui %29 : i1 to i32
    %c0_i32_12 = arith.constant 0 : i32
    %31 = arith.cmpi ne, %30, %c0_i32_12 : i32
    scf.if %31 {
      %c0_15 = arith.constant 0 : index
      %c0_16 = arith.constant 0 : index
      %35 = vector.load %arg8[%c0_15, %c0_16] : memref<8x128xf32, #tpu.memory_space<vmem>>, vector<8x128xf32>
      %36 = arith.minimumf %35, %10 : vector<8x128xf32>
      %c0_17 = arith.constant 0 : index
      %c0_18 = arith.constant 0 : index
      %37 = vector.load %arg8[%c0_17, %c0_18] : memref<8x128xf32, #tpu.memory_space<vmem>>, vector<8x128xf32>
      tpu.vector_store %arg8[%c0_17, %c0_18], %36 {strides = array<i32>} : memref<8x128xf32, #tpu.memory_space<vmem>>, vector<8x128xf32>,
    } else {
    }
    %c0_i32_13 = arith.constant 0 : i32
    %32 = arith.cmpi eq, %arg1, %c0_i32_13 : i32
    %33 = arith.extui %32 : i1 to i32
    %c0_i32_14 = arith.constant 0 : i32
    %34 = arith.cmpi ne, %33, %c0_i32_14 : i32
    scf.if %34 {
      %c0_15 = arith.constant 0 : index
      %c0_16 = arith.constant 0 : index
      %35 = vector.load %arg8[%c0_15, %c0_16] : memref<8x128xf32, #tpu.memory_space<vmem>>, vector<8x128xf32>
      %cst_17 = arith.constant dense<0x7F800000> : vector<8xf32>
      %36 = vector.multi_reduction <minimumf>, %35, %cst_17 [1] : vector<8x128xf32> to vector<8xf32>
      %37 = vector.shape_cast %36 : vector<8xf32> to vector<8x1xf32>
      %38 = arith.mulf %3, %3 : vector<8x256xf32>
      %cst_18 = arith.constant dense<0.000000e+00> : vector<8xf32>
      %39 = vector.multi_reduction <add>, %38, %cst_18 [1] : vector<8x256xf32> to vector<8xf32>
      %40 = vector.shape_cast %39 : vector<8xf32> to vector<8x1xf32>
      %41 = arith.addf %37, %40 : vector<8x1xf32>
      %cst_19 = arith.constant 0.000000e+00 : f32
      %42 = vector.broadcast %cst_19 : f32 to vector<8x1xf32>
      %43 = arith.maximumf %41, %42 : vector<8x1xf32>
      %44 = math.sqrt %43 : vector<8x1xf32>
      %c0_20 = arith.constant 0 : index
      %c0_21 = arith.constant 0 : index
      %45 = vector.load %arg6[%c0_20, %c0_21] : memref<8x1xf32, #tpu.memory_space<vmem>>, vector<8x1xf32>
      %46 = arith.minimumf %44, %45 : vector<8x1xf32>
      %c0_22 = arith.constant 0 : index
      %c0_23 = arith.constant 0 : index
      %47 = vector.load %arg7[%c0_22, %c0_23] : memref<8x1xf32, #tpu.memory_space<vmem>>, vector<8x1xf32>
      tpu.vector_store %arg7[%c0_22, %c0_23], %46 {strides = array<i32>} : memref<8x1xf32, #tpu.memory_space<vmem>>, vector<8x1xf32>,
    } else {
    }
    return
  }
  func.func @transform_0(%arg0: i32, %arg1: i32, %arg2: memref<4xi32, #tpu.memory_space<smem>>) -> (i32, i32) {
    %c0_i32 = arith.constant 0 : i32
    %c0_i32_0 = arith.constant 0 : i32
    return %arg0, %c0_i32 : i32, i32
  }
  func.func @transform_1(%arg0: i32, %arg1: i32, %arg2: memref<4xi32, #tpu.memory_space<smem>>) -> (i32, i32) {
    %c0_i32 = arith.constant 0 : i32
    %c0_i32_0 = arith.constant 0 : i32
    return %arg1, %c0_i32 : i32, i32
  }
  func.func @transform_2(%arg0: i32, %arg1: i32, %arg2: memref<4xi32, #tpu.memory_space<smem>>) -> (i32, i32) {
    %c0_i32 = arith.constant 0 : i32
    %c0_i32_0 = arith.constant 0 : i32
    return %c0_i32, %arg1 : i32, i32
  }
  func.func @transform_3(%arg0: i32, %arg1: i32, %arg2: memref<4xi32, #tpu.memory_space<smem>>) -> (i32, i32) {
    %c3 = arith.constant 3 : index
    %0 = memref.load %arg2[%c3] : memref<4xi32, #tpu.memory_space<smem>>
    %1 = arith.addi %0, %arg0 : i32
    %c0_i32 = arith.constant 0 : i32
    %c0_i32_0 = arith.constant 0 : i32
    return %1, %c0_i32 : i32, i32
  }
  func.func @transform_4(%arg0: i32, %arg1: i32, %arg2: memref<4xi32, #tpu.memory_space<smem>>) -> (i32, i32) {
    %c3 = arith.constant 3 : index
    %0 = memref.load %arg2[%c3] : memref<4xi32, #tpu.memory_space<smem>>
    %1 = arith.addi %0, %arg0 : i32
    %c0_i32 = arith.constant 0 : i32
    %c0_i32_0 = arith.constant 0 : i32
    return %1, %c0_i32 : i32, i32
  }
}

module attributes {stable_mosaic.version = 11 : i64} {
  func.func @_knn_kernel(%arg0: i32, %arg1: i32, %arg2: memref<4xi32, #tpu.memory_space<smem>>, %arg3: memref<8x256xf32, #tpu.memory_space<vmem>>, %arg4: memref<128x256xf32, #tpu.memory_space<vmem>>, %arg5: memref<1x128xf32, #tpu.memory_space<vmem>>, %arg6: memref<8x1xf32, #tpu.memory_space<vmem>>, %arg7: memref<8x1xf32, #tpu.memory_space<vmem>>, %arg8: memref<8x128xf32, #tpu.memory_space<vmem>>) attributes {dimension_semantics = [#tpu.dimension_semantics<parallel>, #tpu.dimension_semantics<arbitrary>], iteration_bounds = array<i64: 1, 1>, scalar_prefetch = 1 : i64, scratch_operands = 1 : i64, tpu.core_type = #tpu.core_type<tc>, window_params = [{transform_indices = @transform_0, window_bounds = array<i64: 8, 256>}, {transform_indices = @transform_1, window_bounds = array<i64: 128, 256>}, {transform_indices = @transform_2, window_bounds = array<i64: 1, 128>}, {transform_indices = @transform_3, window_bounds = array<i64: 8, 1>}, {transform_indices = @transform_4, window_bounds = array<i64: 8, 1>}]} {
    %c0_i32 = arith.constant 0 : i32
    %0 = arith.cmpi eq, %arg1, %c0_i32 : i32
    %1 = arith.extui %0 : i1 to i32
    %c0_i32_0 = arith.constant 0 : i32
    %2 = arith.cmpi ne, %1, %c0_i32_0 : i32
    scf.if %2 {
      %cst_15 = arith.constant 0x7F800000 : f32
      %35 = vector.broadcast %cst_15 : f32 to vector<8x128xf32>
      %c0_16 = arith.constant 0 : index
      %c0_17 = arith.constant 0 : index
      %36 = vector.load %arg8[%c0_16, %c0_17] : memref<8x128xf32, #tpu.memory_space<vmem>>, vector<8x128xf32>
      tpu.vector_store %arg8[%c0_16, %c0_17], %35 {strides = array<i32>} : memref<8x128xf32, #tpu.memory_space<vmem>>, vector<8x128xf32>,
    } else {
    }
    %c0 = arith.constant 0 : index
    %c0_1 = arith.constant 0 : index
    %3 = vector.load %arg3[%c0, %c0_1] : memref<8x256xf32, #tpu.memory_space<vmem>>, vector<8x256xf32>
    %c0_2 = arith.constant 0 : index
    %c0_3 = arith.constant 0 : index
    %4 = vector.load %arg4[%c0_2, %c0_3] : memref<128x256xf32, #tpu.memory_space<vmem>>, vector<128x256xf32>
    %cst = arith.constant dense<0.000000e+00> : vector<8x128xf32>
    %5 = tpu.matmul %3, %4, %cst {dimension_numbers = #tpu.dot_dimension_numbers<[1], [1], [0], [0], [0, 0, 1, 0], [], []>} : vector<8x256xf32>, vector<128x256xf32>, vector<8x128xf32> -> vector<8x128xf32>
    %c0_4 = arith.constant 0 : index
    %c0_5 = arith.constant 0 : index
    %6 = vector.load %arg5[%c0_4, %c0_5] : memref<1x128xf32, #tpu.memory_space<vmem>>, vector<1x128xf32>
    %cst_6 = arith.constant 2.000000e+00 : f32
    %7 = vector.broadcast %cst_6 : f32 to vector<8x128xf32>
    %8 = arith.mulf %7, %5 : vector<8x128xf32>
    %9 = vector.broadcast %6 : vector<1x128xf32> to vector<8x128xf32>
    %10 = arith.subf %9, %8 : vector<8x128xf32>
    %c0_7 = arith.constant 0 : index
    %11 = memref.load %arg2[%c0_7] : memref<4xi32, #tpu.memory_space<smem>>
    %c1 = arith.constant 1 : index
    %12 = memref.load %arg2[%c1] : memref<4xi32, #tpu.memory_space<smem>>
    %c2 = arith.constant 2 : index
    %13 = memref.load %arg2[%c2] : memref<4xi32, #tpu.memory_space<smem>>
    %c128_i32 = arith.constant 128 : i32
    %14 = arith.muli %arg1, %c128_i32 : i32
    %c8_i32 = arith.constant 8 : i32
    %15 = arith.muli %arg0, %c8_i32 : i32
    %16 = arith.addi %11, %15 : i32
    %17 = arith.addi %12, %14 : i32
    %c8_i32_8 = arith.constant 8 : i32
    %18 = arith.addi %16, %c8_i32_8 : i32
    %19 = arith.cmpi slt, %17, %18 : i32
    %20 = arith.addi %12, %14 : i32
    %c128_i32_9 = arith.constant 128 : i32
    %21 = arith.addi %20, %c128_i32_9 : i32
    %22 = arith.cmpi slt, %16, %21 : i32
    %23 = arith.andi %19, %22 : i1
    %c128_i32_10 = arith.constant 128 : i32
    %24 = arith.addi %14, %c128_i32_10 : i32
    %25 = arith.cmpi sgt, %24, %13 : i32
    %26 = arith.ori %23, %25 : i1
    %27 = arith.extui %26 : i1 to i32
    %c0_i32_11 = arith.constant 0 : i32
    %28 = arith.cmpi ne, %27, %c0_i32_11 : i32
    scf.if %28 {
      %35 = tpu.iota {dimensions = array<i32: 0>} : vector<8x128xi32>
      %36 = tpu.iota {dimensions = array<i32: 1>} : vector<8x128xi32>
      %37 = vector.broadcast %14 : i32 to vector<8x128xi32>
      %38 = arith.addi %37, %36 : vector<8x128xi32>
      %39 = vector.broadcast %13 : i32 to vector<8x128xi32>
      %40 = arith.cmpi sge, %38, %39 : vector<8x128xi32>
      %41 = vector.broadcast %16 : i32 to vector<8x128xi32>
      %42 = arith.addi %41, %35 : vector<8x128xi32>
      %43 = vector.broadcast %12 : i32 to vector<8x128xi32>
      %44 = arith.addi %43, %38 : vector<8x128xi32>
      %45 = arith.cmpi eq, %42, %44 : vector<8x128xi32>
      %46 = arith.ori %40, %45 : vector<8x128xi1>
      %cst_15 = arith.constant 0x7F800000 : f32
      %47 = vector.broadcast %cst_15 : f32 to vector<8x128xf32>
      %48 = arith.select %46, %47, %10 : vector<8x128xi1>, vector<8x128xf32>
      %c0_16 = arith.constant 0 : index
      %c0_17 = arith.constant 0 : index
      %49 = vector.load %arg8[%c0_16, %c0_17] : memref<8x128xf32, #tpu.memory_space<vmem>>, vector<8x128xf32>
      %50 = arith.minimumf %49, %48 : vector<8x128xf32>
      %c0_18 = arith.constant 0 : index
      %c0_19 = arith.constant 0 : index
      %51 = vector.load %arg8[%c0_18, %c0_19] : memref<8x128xf32, #tpu.memory_space<vmem>>, vector<8x128xf32>
      tpu.vector_store %arg8[%c0_18, %c0_19], %50 {strides = array<i32>} : memref<8x128xf32, #tpu.memory_space<vmem>>, vector<8x128xf32>,
    } else {
    }
    %true = arith.constant true
    %29 = arith.xori %26, %true : i1
    %30 = arith.extui %29 : i1 to i32
    %c0_i32_12 = arith.constant 0 : i32
    %31 = arith.cmpi ne, %30, %c0_i32_12 : i32
    scf.if %31 {
      %c0_15 = arith.constant 0 : index
      %c0_16 = arith.constant 0 : index
      %35 = vector.load %arg8[%c0_15, %c0_16] : memref<8x128xf32, #tpu.memory_space<vmem>>, vector<8x128xf32>
      %36 = arith.minimumf %35, %10 : vector<8x128xf32>
      %c0_17 = arith.constant 0 : index
      %c0_18 = arith.constant 0 : index
      %37 = vector.load %arg8[%c0_17, %c0_18] : memref<8x128xf32, #tpu.memory_space<vmem>>, vector<8x128xf32>
      tpu.vector_store %arg8[%c0_17, %c0_18], %36 {strides = array<i32>} : memref<8x128xf32, #tpu.memory_space<vmem>>, vector<8x128xf32>,
    } else {
    }
    %c0_i32_13 = arith.constant 0 : i32
    %32 = arith.cmpi eq, %arg1, %c0_i32_13 : i32
    %33 = arith.extui %32 : i1 to i32
    %c0_i32_14 = arith.constant 0 : i32
    %34 = arith.cmpi ne, %33, %c0_i32_14 : i32
    scf.if %34 {
      %c0_15 = arith.constant 0 : index
      %c0_16 = arith.constant 0 : index
      %35 = vector.load %arg8[%c0_15, %c0_16] : memref<8x128xf32, #tpu.memory_space<vmem>>, vector<8x128xf32>
      %cst_17 = arith.constant dense<0x7F800000> : vector<8xf32>
      %36 = vector.multi_reduction <minimumf>, %35, %cst_17 [1] : vector<8x128xf32> to vector<8xf32>
      %37 = vector.shape_cast %36 : vector<8xf32> to vector<8x1xf32>
      %38 = arith.mulf %3, %3 : vector<8x256xf32>
      %cst_18 = arith.constant dense<0.000000e+00> : vector<8xf32>
      %39 = vector.multi_reduction <add>, %38, %cst_18 [1] : vector<8x256xf32> to vector<8xf32>
      %40 = vector.shape_cast %39 : vector<8xf32> to vector<8x1xf32>
      %41 = arith.addf %37, %40 : vector<8x1xf32>
      %cst_19 = arith.constant 0.000000e+00 : f32
      %42 = vector.broadcast %cst_19 : f32 to vector<8x1xf32>
      %43 = arith.maximumf %41, %42 : vector<8x1xf32>
      %44 = math.sqrt %43 : vector<8x1xf32>
      %c0_20 = arith.constant 0 : index
      %c0_21 = arith.constant 0 : index
      %45 = vector.load %arg6[%c0_20, %c0_21] : memref<8x1xf32, #tpu.memory_space<vmem>>, vector<8x1xf32>
      %46 = arith.minimumf %44, %45 : vector<8x1xf32>
      %c0_22 = arith.constant 0 : index
      %c0_23 = arith.constant 0 : index
      %47 = vector.load %arg7[%c0_22, %c0_23] : memref<8x1xf32, #tpu.memory_space<vmem>>, vector<8x1xf32>
      tpu.vector_store %arg7[%c0_22, %c0_23], %46 {strides = array<i32>} : memref<8x1xf32, #tpu.memory_space<vmem>>, vector<8x1xf32>,
    } else {
    }
    return
  }
  func.func @transform_0(%arg0: i32, %arg1: i32, %arg2: memref<4xi32, #tpu.memory_space<smem>>) -> (i32, i32) {
    %c0_i32 = arith.constant 0 : i32
    %c0_i32_0 = arith.constant 0 : i32
    return %arg0, %c0_i32 : i32, i32
  }
  func.func @transform_1(%arg0: i32, %arg1: i32, %arg2: memref<4xi32, #tpu.memory_space<smem>>) -> (i32, i32) {
    %c0_i32 = arith.constant 0 : i32
    %c0_i32_0 = arith.constant 0 : i32
    return %arg1, %c0_i32 : i32, i32
  }
  func.func @transform_2(%arg0: i32, %arg1: i32, %arg2: memref<4xi32, #tpu.memory_space<smem>>) -> (i32, i32) {
    %c0_i32 = arith.constant 0 : i32
    %c0_i32_0 = arith.constant 0 : i32
    return %c0_i32, %arg1 : i32, i32
  }
  func.func @transform_3(%arg0: i32, %arg1: i32, %arg2: memref<4xi32, #tpu.memory_space<smem>>) -> (i32, i32) {
    %c3 = arith.constant 3 : index
    %0 = memref.load %arg2[%c3] : memref<4xi32, #tpu.memory_space<smem>>
    %1 = arith.addi %0, %arg0 : i32
    %c0_i32 = arith.constant 0 : i32
    %c0_i32_0 = arith.constant 0 : i32
    return %1, %c0_i32 : i32, i32
  }
  func.func @transform_4(%arg0: i32, %arg1: i32, %arg2: memref<4xi32, #tpu.memory_space<smem>>) -> (i32, i32) {
    %c3 = arith.constant 3 : index
    %0 = memref.load %arg2[%c3] : memref<4xi32, #tpu.memory_space<smem>>
    %1 = arith.addi %0, %arg0 : i32
    %c0_i32 = arith.constant 0 : i32
    %c0_i32_0 = arith.constant 0 : i32
    return %1, %c0_i32 : i32, i32
  }
}

</mosaic_0001>

<bundles_post_ra>
// kernel: _knn_update_aliased.1
= control target key start
LH: loop header
LB: loop body
LE: loop exit
PB: predicated region body
PF: predicated region fallthrough
CT: control target
= control target key end

     0   :  { %s468_s0 = inlined_call_operand.vmem [shape: s32[4], index: 0, kind: input, shape index: {}]   ;;  %s469_s1 = inlined_call_operand.vmem [shape: f32[8,256], index: 1, kind: input, shape index: {}]   ;;  %s470_s2 = inlined_call_operand.vmem [shape: f32[16,256], index: 2, kind: input, shape index: {}]   ;;  %s471_s3 = inlined_call_operand.vmem [shape: f32[1,128], index: 3, kind: input, shape index: {}]   ;;  %s472_s4 = inlined_call_operand.vmem [shape: f32[32,1], index: 4, kind: input, shape index: {}, may-alias: {4,5}]   ;;  %s473_s5 = inlined_call_operand.vmem [shape: f32[32,1], index: 5, kind: output, shape index: {}, may-alias: {4,5}]  }
   0x1   :  { %s10_s20 = sshll.u32 %s468_s0, 4  ;;  %s11_s20 = int_to_ptr.vmem [resolvable:$true] %s10_s20 }
   0x2   :  { %s289_s21 = scalar_lea.vmem %s11_s20, 16  ;;  %p294_p1 = scmp.lt.s32.totalorder %s11_s20, %s11_s20 }
   0x3   :  { %p290_p0 = scmp.ne.s32.totalorder %s11_s20, %s289_s21  ;;  %p295_p2 = scmp.lt.s32.totalorder %s289_s21, %s289_s21 }
   0x5   :  { %p296_p3 = por %p295_p2, %p294_p1 }
   0x7   :  { %p297_p4 = pnand %p296_p3, %p290_p0 }
   0x9   :  { %300 = shalt.err (!%p297_p4)  }
   0xa   :  { %s303_s22 = smov [#allocation4]  }
   0xb   :  { %13 = dma.vmem_to_smem %s11_s20, 16, %s303_s22, [#allocation3] }
   0xc   :  { %301 = dma.done.wait [#allocation3], 16 }
   0xd   :  { %302 = vsyncadd [#allocation3], 4294967280 }
   0xe   :  { %15 = sfence }
   0xf   :  { %s277_s23 = sld [smem:[#allocation4 + $0x3]]  ;;  %v98_v0 = vld [vmem:[%s470_s2 + $0xf8] sm:$0xff]  ;;  %v97_v1 = vld [vmem:[%s470_s2 + $0xf0] sm:$0xff]  ;;  %v96_v2 = vld [vmem:[%s470_s2 + $0xe8] sm:$0xff]  ;;  %v304_v3 = vmov inf  }
  0x10   :  { %64 = vst [vmem:[#allocation2] sm:$0xff] %v304_v3  ;;  %99 = vmatprep.subr.mxu0 %v98_v0  ;;  %v95_v4 = vld [vmem:[%s470_s2 + $0xe0] sm:$0xff]  ;;  %v94_v5 = vld [vmem:[%s470_s2 + $0xd8] sm:$0xff]  ;;  %v93_v6 = vld [vmem:[%s470_s2 + $0xd0] sm:$0xff]  ;;  %s178_s21 = sld [smem:[#allocation4]] }
  0x11   :  { %100 = vmatpush1.xpose.msra.mxu0 %v97_v1  ;;  %v92_v7 = vld [vmem:[%s470_s2 + $0xc8] sm:$0xff]  ;;  %v91_v9 = vld [vmem:[%s470_s2 + $0xc0] sm:$0xff]  ;;  %v90_v10 = vld [vmem:[%s470_s2 + $0xb8] sm:$0xff]  ;;  %s282_s22 = sld [smem:[#allocation4 + $0x1]] }
  0x12   :  { %101 = vmatprep.subr.mxu0 %v96_v2  ;;  %v362_v8 = vld [vmem:[%s469_s1 + $0x8] sm:$0xff]  ;;  %v89_v11 = vld [vmem:[%s470_s2 + $0xb0] sm:$0xff]  ;;  %v87_v13 = vld [vmem:[%s470_s2 + $0xa0] sm:$0xff] }
  0x13   :  { %163 = vmatprep.mubr.f32.mxu0 %v362_v8  ;;  %v88_v12 = vld [vmem:[%s470_s2 + $0xa8] sm:$0xff]  ;;  %v86_v14 = vld [vmem:[%s470_s2 + $0x98] sm:$0xff]  ;;  %v85_v15 = vld [vmem:[%s470_s2 + $0x90] sm:$0xff] }
  0x14   :  { %v84_v16 = vld [vmem:[%s470_s2 + $0x88] sm:$0xff]  ;;  %v83_v17 = vld [vmem:[%s470_s2 + $0x80] sm:$0xff]  ;;  %v82_v18 = vld [vmem:[%s470_s2 + $0x78] sm:$0xff] }
  0x15   :  { %p46_p5 = scmp.lt.s32.totalorder %s277_s23, 3  ;;  %102 = vmatpush1.xpose.msra.mxu0 %v95_v4  ;;  %v81_v19 = vld [vmem:[%s470_s2 + $0x70] sm:$0xff]  ;;  %v80_v20 = vld [vmem:[%s470_s2 + $0x68] sm:$0xff]  ;;  %v79_v21 = vld [vmem:[%s470_s2 + $0x60] sm:$0xff] }
  0x16   :  { %103 = vmatprep.subr.mxu0 %v94_v5  ;;  %v78_v22 = vld [vmem:[%s470_s2 + $0x58] sm:$0xff]  ;;  %v77_v23 = vld [vmem:[%s470_s2 + $0x50] sm:$0xff]  ;;  %v76_v24 = vld [vmem:[%s470_s2 + $0x48] sm:$0xff]  ;;  %s185_s24 = sadd.s32 8, %s178_s21 }
  0x17   :  { %s476_s23 = smov (!%p46_p5, %s277_s23), 3  ;;  %v75_v25 = vld [vmem:[%s470_s2 + $0x40] sm:$0xff]  ;;  %v74_v26 = vld [vmem:[%s470_s2 + $0x38] sm:$0xff]  ;;  %v73_v27 = vld [vmem:[%s470_s2 + $0x30] sm:$0xff]  ;;  %p186_p6 = scmp.lt.s32.totalorder %s282_s22, %s185_s24 }
  0x18   :  { %s278_s12 = sshll.u32 %s476_s23, 3  ;;  %v72_v28 = vld [vmem:[%s470_s2 + $0x28] sm:$0xff]  ;;  %v71_v29 = vld [vmem:[%s470_s2 + $0x20] sm:$0xff]  ;;  %v70_v30 = vld [vmem:[%s470_s2 + $0x18] sm:$0xff]  ;;  %s283_s23 = sld [smem:[#allocation4 + $0x2]] }
  0x19   :  { %104 = vmatpush1.xpose.msra.mxu0 %v93_v6  ;;  %s367_s17 = scalar_lea.vmem %s472_s4, %s278_s12  ;;  %s372_s20 = scalar_lea.vmem %s473_s5, %s278_s12  ;;  %v69_v31 = vld [vmem:[%s470_s2 + $0x10] sm:$0xff]  ;;  %v68_v32 = vld [vmem:[%s470_s2 + $0x8] sm:$0xff]  ;;  %v67_v33 = vld [vmem:[%s470_s2] sm:$0xff] }
  0x1a   :  { %105 = vmatprep.subr.mxu0 %v92_v7  ;;  %v65_v34 = vld [vmem:[%s469_s1] sm:$0xff]  ;;  %s187_s4 = sadd.s32 128, %s282_s22 }
  0x1b   :  { %p188_p7 = scmp.lt.s32.totalorder %s178_s21, %s187_s4  ;;  %v281_v36 = vld [vmem:[%s471_s3] ss:$0 sm:$0xff] }
  0x1d   :  { %106 = vmatpush1.xpose.msra.mxu0 %v91_v9  ;;  %p189_p8 = pnand %p188_p7, %p186_p6 }
  0x1e   :  { %107 = vmatprep.subr.mxu0 %v90_v10  ;;  %p284_p9 = scmp.lt.s32.totalorder %s283_s23, 128 }
  0x1f   :  { %p190_p10 = pneg %p189_p8 }
  0x21   :  { %108 = vmatpush1.xpose.msra.mxu0 %v89_v11  ;;  %p453_p11 = por %p284_p9, %p190_p10 }
  0x22   :  { %109 = vmatprep.subr.mxu0 %v88_v12  ;;  %v197_v40 = vlaneseq (%p453_p11)  ;;  %v203_v41 = vstv (%p453_p11), %s283_s23  ;;  %v205_v42 = vstv (%p453_p11), %s178_s21  ;;  %v207_v43 = vstv (%p453_p11), %s282_s22  ;;  %v212_v48 = vld [vmem:[#allocation2] sm:$0xff] (%p453_p11) }
  0x24   :  { %v198_v44 = vshrl.u32 (%p453_p11), %v197_v40, 7  ;;  %v200_v45 = vand.u32 (%p453_p11), 127, %v197_v40 }
  0x25   :  { %110 = vmatpush1.xpose.msra.mxu0 %v87_v13 }
  0x26   :  { %111 = vmatprep.subr.mxu0 %v86_v14  ;;  %vm204_vm0 = vcmp.ge.s32.totalorder (%p453_p11), %v200_v45, %v203_v41  ;;  %v206_v46 = vadd.s32 (%p453_p11), %v205_v42, %v198_v44  ;;  %v208_v47 = vadd.s32 (%p453_p11), %v207_v43, %v200_v45 }
  0x28   :  { %vm209_vm1 = vcmp.eq.s32.totalorder (%p453_p11), %v206_v46, %v208_v47 }
  0x29   :  { %112 = vmatpush1.xpose.msra.mxu0 %v85_v15  ;;  %vm210_vm2 = vmor (%p453_p11), %vm204_vm0, %vm209_vm1 }
  0x2a   :  { %113 = vmatprep.subr.mxu0 %v84_v16 }
  0x2d   :  { %114 = vmatpush1.xpose.msra.mxu0 %v83_v17 }
  0x2e   :  { %115 = vmatprep.subr.mxu0 %v82_v18 }
  0x31   :  { %116 = vmatpush1.xpose.msra.mxu0 %v81_v19 }
  0x32   :  { %117 = vmatprep.subr.mxu0 %v80_v20 }
  0x35   :  { %118 = vmatpush1.xpose.msra.mxu0 %v79_v21 }
  0x36   :  { %119 = vmatprep.subr.mxu0 %v78_v22 }
  0x39   :  { %120 = vmatpush1.xpose.msra.mxu0 %v77_v23 }
  0x3a   :  { %121 = vmatprep.subr.mxu0 %v76_v24 }
  0x3d   :  { %122 = vmatpush1.xpose.msra.mxu0 %v75_v25 }
  0x3e   :  { %123 = vmatprep.subr.mxu0 %v74_v26 }
  0x41   :  { %124 = vmatpush1.xpose.msra.mxu0 %v73_v27 }
  0x42   :  { %125 = vmatprep.subr.mxu0 %v72_v28 }
  0x45   :  { %126 = vmatpush1.xpose.msra.mxu0 %v71_v29 }
  0x46   :  { %127 = vmatprep.subr.mxu0 %v70_v30 }
  0x49   :  { %128 = vmatpush1.xpose.msra.mxu0 %v69_v31 }
  0x4a   :  { %129 = vmatprep.subr.mxu0 %v68_v32 }
  0x4d   :  { %130 = vmatpush1.xpose.msra.mxu0 %v67_v33 }
  0x50   :  { %164 = vmatmul.mubr.f32.vlgmr.msra.gmra.mxu0 %v65_v34 }
 0x10f   :  { %196 = sbr.rel (!%p453_p11) target bundleno = 281 (0x119), region = 25 }
 0x110   :  { %v165_v35 = vpop.f32.mrf.mxu0 }
 0x111   :  { %v170_v37 = vmul.f32 2.0, %v165_v35 }
 0x112   :  { %v167_v38 = vpop.f32.mrf.mxu0 }
 0x113   :  { %v177_v39 = vsub.f32 %v281_v36, %v170_v37 }
 0x115   :  { %v211_v49 = vsel %vm210_vm2, inf, %v177_v39 }
 0x116   :  { %v213_v50 = vmin.f32 %v212_v48, %v211_v49 }
 0x118   :  { %214 = vst [vmem:[#allocation2] sm:$0xff] %v213_v50 }
 0x119 PF:  { %217 = sbr.rel (%p453_p11) target bundleno = 291 (0x123), region = 29 }
 0x11f   :  { %v218_v51 = vld [vmem:[#allocation2] sm:$0xff] }
 0x120   :  { %v219_v52 = vmin.f32 %v218_v51, %v177_v39 }
 0x122   :  { %220 = vst [vmem:[#allocation2] sm:$0xff] %v219_v52 }
 0x123 PF:  { %v227_v54 = vmul.f32 %v65_v34, %v65_v34  ;;  %v228_v55 = vmul.f32 %v362_v8, %v362_v8  ;;  %v241_v63 = vld [vmem:[%s367_s17] sm:$0xff]  ;;  %vm243_vm5 = vcmask 7168  }
 0x125   :  { %v229_v56 = vadd.f32 %v228_v55, %v227_v54 }
 0x129   :  { %v224_v53 = vld [vmem:[#allocation2] sm:$0xff] }
 0x12a   :  { %225 = vmin.xlane.f32.xlu0 %v224_v53 }
 0x12e   :  { %230 = vadd.xlane.f32.xlu0 %v229_v56 }
 0x1b3   :  { %v226_v57 = vpop.xlane.xlu0 %225 }
 0x1b7   :  { %v231_v58 = vpop.xlane.xlu0 %230 }
 0x1b8   :  { %v232_v59 = vadd.f32 %v231_v58, %v226_v57 }
 0x1ba   :  { %v233_v60 = vmax.f32 %v232_v59, 0.0 }
 0x1bc   :  { %287 = vrsqrt.f32 %v233_v60  ;;  %vm236_vm3 = vcmp.eq.f32.partialorder %v233_v60, inf  ;;  %v239_v0 = vand.u32 2147483648, %v233_v60  ;;  %vm238_vm4 = vcmp.eq.f32.partialorder %v233_v60, 0.0 }
 0x1c9   :  { %v288_v61 = vpop.eup %287 }
 0x1ca   :  { %v235_v62 = vmul.f32 %v288_v61, %v233_v60 }
 0x1cc   :  { %v237_v1 = vsel %vm236_vm3, %v233_v60, %v235_v62 }
 0x1cd   :  { %v240_v2 = vsel %vm238_vm4, %v239_v0, %v237_v1 }
 0x1ce   :  { %v242_v3 = vmin.f32 %v240_v2, %v241_v63 }
 0x1d0   :  { %244 = vst.msk [vmem:[%s372_s20] sm:$0xff] %vm243_vm5, %v242_v3 }

// kernel: _knn_update_sliced.1
= control target key start
LH: loop header
LB: loop body
LE: loop exit
PB: predicated region body
PF: predicated region fallthrough
CT: control target
= control target key end

     0   :  { %s468_s0 = inlined_call_operand.vmem [shape: s32[4], index: 0, kind: input, shape index: {}]   ;;  %s469_s1 = inlined_call_operand.vmem [shape: f32[8,256], index: 1, kind: input, shape index: {}]   ;;  %s470_s2 = inlined_call_operand.vmem [shape: f32[16,256], index: 2, kind: input, shape index: {}]   ;;  %s471_s3 = inlined_call_operand.vmem [shape: f32[1,128], index: 3, kind: input, shape index: {}]   ;;  %s472_s4 = inlined_call_operand.vmem [shape: f32[8,1], index: 4, kind: input, shape index: {}]   ;;  %s473_s5 = inlined_call_operand.vmem [shape: f32[8,1], index: 5, kind: output, shape index: {}]  }
   0x1   :  { %s10_s20 = sshll.u32 %s468_s0, 4  ;;  %s11_s20 = int_to_ptr.vmem [resolvable:$true] %s10_s20 }
   0x2   :  { %s289_s21 = scalar_lea.vmem %s11_s20, 16  ;;  %p294_p1 = scmp.lt.s32.totalorder %s11_s20, %s11_s20 }
   0x3   :  { %p290_p0 = scmp.ne.s32.totalorder %s11_s20, %s289_s21  ;;  %p295_p2 = scmp.lt.s32.totalorder %s289_s21, %s289_s21 }
   0x5   :  { %p296_p3 = por %p295_p2, %p294_p1 }
   0x7   :  { %p297_p4 = pnand %p296_p3, %p290_p0 }
   0x9   :  { %300 = shalt.err (!%p297_p4)  }
   0xa   :  { %s303_s22 = smov [#allocation4]  }
   0xb   :  { %13 = dma.vmem_to_smem %s11_s20, 16, %s303_s22, [#allocation3] }
   0xc   :  { %301 = dma.done.wait [#allocation3], 16 }
   0xd   :  { %302 = vsyncadd [#allocation3], 4294967280 }
   0xe   :  { %15 = sfence }
   0xf   :  { %s277_s23 = sld [smem:[#allocation4 + $0x3]]  ;;  %v98_v0 = vld [vmem:[%s470_s2 + $0xf8] sm:$0xff]  ;;  %v97_v1 = vld [vmem:[%s470_s2 + $0xf0] sm:$0xff]  ;;  %v96_v2 = vld [vmem:[%s470_s2 + $0xe8] sm:$0xff]  ;;  %v304_v3 = vmov inf  }
  0x10   :  { %64 = vst [vmem:[#allocation2] sm:$0xff] %v304_v3  ;;  %99 = vmatprep.subr.mxu0 %v98_v0  ;;  %v95_v4 = vld [vmem:[%s470_s2 + $0xe0] sm:$0xff]  ;;  %v94_v5 = vld [vmem:[%s470_s2 + $0xd8] sm:$0xff]  ;;  %v93_v6 = vld [vmem:[%s470_s2 + $0xd0] sm:$0xff]  ;;  %s178_s21 = sld [smem:[#allocation4]] }
  0x11   :  { %100 = vmatpush1.xpose.msra.mxu0 %v97_v1  ;;  %v92_v7 = vld [vmem:[%s470_s2 + $0xc8] sm:$0xff]  ;;  %v91_v9 = vld [vmem:[%s470_s2 + $0xc0] sm:$0xff]  ;;  %v90_v10 = vld [vmem:[%s470_s2 + $0xb8] sm:$0xff]  ;;  %s282_s22 = sld [smem:[#allocation4 + $0x1]] }
  0x12   :  { %101 = vmatprep.subr.mxu0 %v96_v2  ;;  %v362_v8 = vld [vmem:[%s469_s1 + $0x8] sm:$0xff]  ;;  %v89_v11 = vld [vmem:[%s470_s2 + $0xb0] sm:$0xff]  ;;  %v87_v13 = vld [vmem:[%s470_s2 + $0xa0] sm:$0xff] }
  0x13   :  { %163 = vmatprep.mubr.f32.mxu0 %v362_v8  ;;  %v88_v12 = vld [vmem:[%s470_s2 + $0xa8] sm:$0xff]  ;;  %v86_v14 = vld [vmem:[%s470_s2 + $0x98] sm:$0xff]  ;;  %v85_v15 = vld [vmem:[%s470_s2 + $0x90] sm:$0xff] }
  0x14   :  { %v84_v16 = vld [vmem:[%s470_s2 + $0x88] sm:$0xff]  ;;  %v83_v17 = vld [vmem:[%s470_s2 + $0x80] sm:$0xff]  ;;  %v82_v18 = vld [vmem:[%s470_s2 + $0x78] sm:$0xff] }
  0x15   :  { %p46_p5 = scmp.lt.s32.totalorder %s277_s23, 0  ;;  %102 = vmatpush1.xpose.msra.mxu0 %v95_v4  ;;  %v81_v19 = vld [vmem:[%s470_s2 + $0x70] sm:$0xff]  ;;  %v80_v20 = vld [vmem:[%s470_s2 + $0x68] sm:$0xff]  ;;  %v79_v21 = vld [vmem:[%s470_s2 + $0x60] sm:$0xff] }
  0x16   :  { %103 = vmatprep.subr.mxu0 %v94_v5  ;;  %v78_v22 = vld [vmem:[%s470_s2 + $0x58] sm:$0xff]  ;;  %v77_v23 = vld [vmem:[%s470_s2 + $0x50] sm:$0xff]  ;;  %v76_v24 = vld [vmem:[%s470_s2 + $0x48] sm:$0xff]  ;;  %s185_s24 = sadd.s32 8, %s178_s21 }
  0x17   :  { %s476_s23 = smov (!%p46_p5, %s277_s23), 0  ;;  %v75_v25 = vld [vmem:[%s470_s2 + $0x40] sm:$0xff]  ;;  %v74_v26 = vld [vmem:[%s470_s2 + $0x38] sm:$0xff]  ;;  %v73_v27 = vld [vmem:[%s470_s2 + $0x30] sm:$0xff]  ;;  %p186_p6 = scmp.lt.s32.totalorder %s282_s22, %s185_s24 }
  0x18   :  { %s278_s12 = sshll.u32 %s476_s23, 3  ;;  %v72_v28 = vld [vmem:[%s470_s2 + $0x28] sm:$0xff]  ;;  %v71_v29 = vld [vmem:[%s470_s2 + $0x20] sm:$0xff]  ;;  %v70_v30 = vld [vmem:[%s470_s2 + $0x18] sm:$0xff]  ;;  %s283_s23 = sld [smem:[#allocation4 + $0x2]] }
  0x19   :  { %104 = vmatpush1.xpose.msra.mxu0 %v93_v6  ;;  %s367_s17 = scalar_lea.vmem %s472_s4, %s278_s12  ;;  %s372_s20 = scalar_lea.vmem %s473_s5, %s278_s12  ;;  %v69_v31 = vld [vmem:[%s470_s2 + $0x10] sm:$0xff]  ;;  %v68_v32 = vld [vmem:[%s470_s2 + $0x8] sm:$0xff]  ;;  %v67_v33 = vld [vmem:[%s470_s2] sm:$0xff] }
  0x1a   :  { %105 = vmatprep.subr.mxu0 %v92_v7  ;;  %v65_v34 = vld [vmem:[%s469_s1] sm:$0xff]  ;;  %s187_s4 = sadd.s32 128, %s282_s22 }
  0x1b   :  { %p188_p7 = scmp.lt.s32.totalorder %s178_s21, %s187_s4  ;;  %v281_v36 = vld [vmem:[%s471_s3] ss:$0 sm:$0xff] }
  0x1d   :  { %106 = vmatpush1.xpose.msra.mxu0 %v91_v9  ;;  %p189_p8 = pnand %p188_p7, %p186_p6 }
  0x1e   :  { %107 = vmatprep.subr.mxu0 %v90_v10  ;;  %p284_p9 = scmp.lt.s32.totalorder %s283_s23, 128 }
  0x1f   :  { %p190_p10 = pneg %p189_p8 }
  0x21   :  { %108 = vmatpush1.xpose.msra.mxu0 %v89_v11  ;;  %p453_p11 = por %p284_p9, %p190_p10 }
  0x22   :  { %109 = vmatprep.subr.mxu0 %v88_v12  ;;  %v197_v40 = vlaneseq (%p453_p11)  ;;  %v203_v41 = vstv (%p453_p11), %s283_s23  ;;  %v205_v42 = vstv (%p453_p11), %s178_s21  ;;  %v207_v43 = vstv (%p453_p11), %s282_s22  ;;  %v212_v48 = vld [vmem:[#allocation2] sm:$0xff] (%p453_p11) }
  0x24   :  { %v198_v44 = vshrl.u32 (%p453_p11), %v197_v40, 7  ;;  %v200_v45 = vand.u32 (%p453_p11), 127, %v197_v40 }
  0x25   :  { %110 = vmatpush1.xpose.msra.mxu0 %v87_v13 }
  0x26   :  { %111 = vmatprep.subr.mxu0 %v86_v14  ;;  %vm204_vm0 = vcmp.ge.s32.totalorder (%p453_p11), %v200_v45, %v203_v41  ;;  %v206_v46 = vadd.s32 (%p453_p11), %v205_v42, %v198_v44  ;;  %v208_v47 = vadd.s32 (%p453_p11), %v207_v43, %v200_v45 }
  0x28   :  { %vm209_vm1 = vcmp.eq.s32.totalorder (%p453_p11), %v206_v46, %v208_v47 }
  0x29   :  { %112 = vmatpush1.xpose.msra.mxu0 %v85_v15  ;;  %vm210_vm2 = vmor (%p453_p11), %vm204_vm0, %vm209_vm1 }
  0x2a   :  { %113 = vmatprep.subr.mxu0 %v84_v16 }
  0x2d   :  { %114 = vmatpush1.xpose.msra.mxu0 %v83_v17 }
  0x2e   :  { %115 = vmatprep.subr.mxu0 %v82_v18 }
  0x31   :  { %116 = vmatpush1.xpose.msra.mxu0 %v81_v19 }
  0x32   :  { %117 = vmatprep.subr.mxu0 %v80_v20 }
  0x35   :  { %118 = vmatpush1.xpose.msra.mxu0 %v79_v21 }
  0x36   :  { %119 = vmatprep.subr.mxu0 %v78_v22 }
  0x39   :  { %120 = vmatpush1.xpose.msra.mxu0 %v77_v23 }
  0x3a   :  { %121 = vmatprep.subr.mxu0 %v76_v24 }
  0x3d   :  { %122 = vmatpush1.xpose.msra.mxu0 %v75_v25 }
  0x3e   :  { %123 = vmatprep.subr.mxu0 %v74_v26 }
  0x41   :  { %124 = vmatpush1.xpose.msra.mxu0 %v73_v27 }
  0x42   :  { %125 = vmatprep.subr.mxu0 %v72_v28 }
  0x45   :  { %126 = vmatpush1.xpose.msra.mxu0 %v71_v29 }
  0x46   :  { %127 = vmatprep.subr.mxu0 %v70_v30 }
  0x49   :  { %128 = vmatpush1.xpose.msra.mxu0 %v69_v31 }
  0x4a   :  { %129 = vmatprep.subr.mxu0 %v68_v32 }
  0x4d   :  { %130 = vmatpush1.xpose.msra.mxu0 %v67_v33 }
  0x50   :  { %164 = vmatmul.mubr.f32.vlgmr.msra.gmra.mxu0 %v65_v34 }
 0x10f   :  { %196 = sbr.rel (!%p453_p11) target bundleno = 281 (0x119), region = 25 }
 0x110   :  { %v165_v35 = vpop.f32.mrf.mxu0 }
 0x111   :  { %v170_v37 = vmul.f32 2.0, %v165_v35 }
 0x112   :  { %v167_v38 = vpop.f32.mrf.mxu0 }
 0x113   :  { %v177_v39 = vsub.f32 %v281_v36, %v170_v37 }
 0x115   :  { %v211_v49 = vsel %vm210_vm2, inf, %v177_v39 }
 0x116   :  { %v213_v50 = vmin.f32 %v212_v48, %v211_v49 }
 0x118   :  { %214 = vst [vmem:[#allocation2] sm:$0xff] %v213_v50 }
 0x119 PF:  { %217 = sbr.rel (%p453_p11) target bundleno = 291 (0x123), region = 29 }
 0x11f   :  { %v218_v51 = vld [vmem:[#allocation2] sm:$0xff] }
 0x120   :  { %v219_v52 = vmin.f32 %v218_v51, %v177_v39 }
 0x122   :  { %220 = vst [vmem:[#allocation2] sm:$0xff] %v219_v52 }
 0x123 PF:  { %v227_v54 = vmul.f32 %v65_v34, %v65_v34  ;;  %v228_v55 = vmul.f32 %v362_v8, %v362_v8  ;;  %v241_v63 = vld [vmem:[%s367_s17] sm:$0xff]  ;;  %vm243_vm5 = vcmask 7168  }
 0x125   :  { %v229_v56 = vadd.f32 %v228_v55, %v227_v54 }
 0x129   :  { %v224_v53 = vld [vmem:[#allocation2] sm:$0xff] }
 0x12a   :  { %225 = vmin.xlane.f32.xlu0 %v224_v53 }
 0x12e   :  { %230 = vadd.xlane.f32.xlu0 %v229_v56 }
 0x1b3   :  { %v226_v57 = vpop.xlane.xlu0 %225 }
 0x1b7   :  { %v231_v58 = vpop.xlane.xlu0 %230 }
 0x1b8   :  { %v232_v59 = vadd.f32 %v231_v58, %v226_v57 }
 0x1ba   :  { %v233_v60 = vmax.f32 %v232_v59, 0.0 }
 0x1bc   :  { %287 = vrsqrt.f32 %v233_v60  ;;  %vm236_vm3 = vcmp.eq.f32.partialorder %v233_v60, inf  ;;  %v239_v0 = vand.u32 2147483648, %v233_v60  ;;  %vm238_vm4 = vcmp.eq.f32.partialorder %v233_v60, 0.0 }
 0x1c9   :  { %v288_v61 = vpop.eup %287 }
 0x1ca   :  { %v235_v62 = vmul.f32 %v288_v61, %v233_v60 }
 0x1cc   :  { %v237_v1 = vsel %vm236_vm3, %v233_v60, %v235_v62 }
 0x1cd   :  { %v240_v2 = vsel %vm238_vm4, %v239_v0, %v237_v1 }
 0x1ce   :  { %v242_v3 = vmin.f32 %v240_v2, %v241_v63 }
 0x1d0   :  { %244 = vst.msk [vmem:[%s372_s20] sm:$0xff] %vm243_vm5, %v242_v3 }

</bundles_post_ra>
